<compile_context>
chip_gen: v6e
topology: v6e:2x2x1
jax: 0.10.0
libtpu: 0.0.40
codegen_flags: <defaults>
</compile_context>

<pallas_src>
import jax
import jax.numpy as jnp
from jax.experimental import pallas as pl
from jax.experimental.pallas import tpu as pltpu

IN_FEATURES = 768
HIDDEN = 256
OUT_FEATURES = 10
OUT_PADDED = 128  # lane-dense padded output width


def _mlp_kernel(x_ref, w1_ref, b1_ref, w2_ref, b2_ref, o_ref):
    # x_ref:(TM,768) bf16 | w1_ref:(768,256) bf16 | b1_ref:(1,256) f32
    # w2_ref:(256,128) bf16 | b2_ref:(1,128) f32  | o_ref:(TM,128) f32
    h = jnp.dot(x_ref[...], w1_ref[...], preferred_element_type=jnp.float32)
    h = jnp.maximum(h + b1_ref[...], 0.0)  # f32 bias + ReLU on the VPU
    out = jnp.dot(h.astype(jnp.bfloat16), w2_ref[...],
                  preferred_element_type=jnp.float32)
    o_ref[...] = out + b2_ref[...]


def _round_up(n, m):
    return ((n + m - 1) // m) * m


def gcsn_forward(x_nchw, w1, b1, w2, b2):
    """GCsN forward: Flatten -> Linear(768,256) -> ReLU -> Linear(256,10)."""
    B = x_nchw.shape[0]
    x_flat = x_nchw.reshape(B, -1)  # same element order as torch.nn.Flatten (NCHW)
    assert x_flat.shape[1] == IN_FEATURES, (
        f"expected {IN_FEATURES} features, got {x_flat.shape[1]}")

    # bf16 on the MXU, f32 accumulation / elementwise.
    x_bf16 = x_flat.astype(jnp.bfloat16)
    w1_bf16 = w1.astype(jnp.bfloat16)
    w2_bf16 = w2.astype(jnp.bfloat16)

    # Zero-pad layer-2 weight/bias once to a full 128-lane tile.
    w2_pad = jnp.pad(w2_bf16, ((0, 0), (0, OUT_PADDED - OUT_FEATURES)))
    b2_pad = jnp.pad(b2.reshape(1, OUT_FEATURES),
                     ((0, 0), (0, OUT_PADDED - OUT_FEATURES)))
    b1_2d = b1.reshape(1, HIDDEN)

    # Batch tiling: one sublane-aligned tile for small B, 128-row pipelined
    # tiles (weights VMEM-resident) for large B.
    tm = 128 if B >= 128 else _round_up(B, 8)
    b_pad = _round_up(B, tm)
    if b_pad != B:
        x_bf16 = jnp.pad(x_bf16, ((0, b_pad - B), (0, 0)))
    grid = (b_pad // tm,)

    flops = 2 * b_pad * (IN_FEATURES * HIDDEN + HIDDEN * OUT_PADDED)
    bytes_accessed = (x_bf16.size * 2 + w1_bf16.size * 2 + w2_pad.size * 2
                      + b1_2d.size * 4 + b2_pad.size * 4
                      + b_pad * OUT_PADDED * 4)

    out = pl.pallas_call(
        _mlp_kernel,
        out_shape=jax.ShapeDtypeStruct((b_pad, OUT_PADDED), jnp.float32),
        grid_spec=pltpu.PrefetchScalarGridSpec(
            num_scalar_prefetch=0,
            grid=grid,
            in_specs=[
                pl.BlockSpec((tm, IN_FEATURES), lambda i: (i, 0)),      # x tile
                pl.BlockSpec((IN_FEATURES, HIDDEN), lambda i: (0, 0)),  # w1 (resident)
                pl.BlockSpec((1, HIDDEN), lambda i: (0, 0)),            # b1 (resident)
                pl.BlockSpec((HIDDEN, OUT_PADDED), lambda i: (0, 0)),   # w2 (resident)
                pl.BlockSpec((1, OUT_PADDED), lambda i: (0, 0)),        # b2 (resident)
            ],
            out_specs=pl.BlockSpec((tm, OUT_PADDED), lambda i: (i, 0)),
        ),
        compiler_params=pltpu.CompilerParams(
            dimension_semantics=("parallel",)),  # megacore split on v7x
        cost_estimate=pl.CostEstimate(
            flops=flops, transcendentals=0, bytes_accessed=bytes_accessed),
    )(x_bf16, w1_bf16, b1_2d, w2_pad, b2_pad)

    return out[:B, :OUT_FEATURES]


def init_params(key):
    """Deterministic synthetic params with the shapes implied by the module.

    PyTorch nn.Linear stores weight as (out_features, in_features); we keep
    the math-friendly (in, out) layout, which is W.T of the torch layout.
    """
    k1, k2, k3, k4 = jax.random.split(key, 4)
    w1 = jax.random.normal(k1, (IN_FEATURES, HIDDEN), jnp.float32) * (1.0 / jnp.sqrt(768.0))
    b1 = jax.random.normal(k2, (HIDDEN,), jnp.float32) * 0.01
    w2 = jax.random.normal(k3, (HIDDEN, OUT_FEATURES), jnp.float32) * (1.0 / jnp.sqrt(256.0))
    b2 = jax.random.normal(k4, (OUT_FEATURES,), jnp.float32) * 0.01
    return w1, b1, w2, b2


if __name__ == "__main__":
    key = jax.random.PRNGKey(0)
    kx, kp = jax.random.split(key)

    # Small NCHW input whose flattened size is 768: (B=8, C=3, H=16, W=16)
    x = jax.random.normal(kx, (8, 3, 16, 16), jnp.float32)
    w1, b1, w2, b2 = init_params(kp)

    out = jax.block_until_ready(gcsn_forward(x, w1, b1, w2, b2))
    assert out.shape == (8, 10)

    # Reference mirroring the kernel's bf16-MXU / f32-accumulate numerics.
    x_flat = x.reshape(8, -1)
    h = jnp.maximum(
        jnp.dot(x_flat.astype(jnp.bfloat16), w1.astype(jnp.bfloat16),
                preferred_element_type=jnp.float32) + b1, 0.0)
    ref_bf16 = jnp.dot(h.astype(jnp.bfloat16), w2.astype(jnp.bfloat16),
                       preferred_element_type=jnp.float32) + b2
    assert jnp.allclose(out, ref_bf16, atol=1e-2, rtol=1e-2), "mismatch vs bf16 reference"

    # Loose check against the full-f32 reference (semantic correctness).
    ref_f32 = jnp.maximum(x_flat @ w1 + b1, 0.0) @ w2 + b2
    assert jnp.allclose(out, ref_f32, atol=5e-2, rtol=5e-2), "mismatch vs f32 reference"

    print("KERNEL_OK")
</pallas_src>

<mosaic_0001>
module attributes {stable_mosaic.version = 11 : i64} {
  func.func @_mlp_kernel(%arg0: i32, %arg1: memref<8x768xbf16, #tpu.memory_space<vmem>>, %arg2: memref<768x256xbf16, #tpu.memory_space<vmem>>, %arg3: memref<1x256xf32, #tpu.memory_space<vmem>>, %arg4: memref<256x128xbf16, #tpu.memory_space<vmem>>, %arg5: memref<1x128xf32, #tpu.memory_space<vmem>>, %arg6: memref<8x128xf32, #tpu.memory_space<vmem>>) attributes {dimension_semantics = [#tpu.dimension_semantics<parallel>], iteration_bounds = array<i64: 1>, scalar_prefetch = 0 : i64, scratch_operands = 0 : i64, tpu.core_type = #tpu.core_type<tc>, window_params = [{transform_indices = @transform_0, window_bounds = array<i64: 8, 768>}, {pipeline_mode = #tpu.pipeline_mode<synchronous>, transform_indices = @transform_1, window_bounds = array<i64: 768, 256>}, {pipeline_mode = #tpu.pipeline_mode<synchronous>, transform_indices = @transform_2, window_bounds = array<i64: 1, 256>}, {pipeline_mode = #tpu.pipeline_mode<synchronous>, transform_indices = @transform_3, window_bounds = array<i64: 256, 128>}, {pipeline_mode = #tpu.pipeline_mode<synchronous>, transform_indices = @transform_4, window_bounds = array<i64: 1, 128>}, {transform_indices = @transform_5, window_bounds = array<i64: 8, 128>}]} {
    %c0 = arith.constant 0 : index
    %c0_0 = arith.constant 0 : index
    %0 = vector.load %arg1[%c0, %c0_0] : memref<8x768xbf16, #tpu.memory_space<vmem>>, vector<8x768xbf16>
    %c0_1 = arith.constant 0 : index
    %c0_2 = arith.constant 0 : index
    %1 = vector.load %arg2[%c0_1, %c0_2] : memref<768x256xbf16, #tpu.memory_space<vmem>>, vector<768x256xbf16>
    %cst = arith.constant dense<0.000000e+00> : vector<8x256xf32>
    %2 = tpu.matmul %0, %1, %cst {dimension_numbers = #tpu.dot_dimension_numbers<[1], [0], [0], [1], [0, 0, 1, 1], [], []>} : vector<8x768xbf16>, vector<768x256xbf16>, vector<8x256xf32> -> vector<8x256xf32>
    %c0_3 = arith.constant 0 : index
    %c0_4 = arith.constant 0 : index
    %3 = vector.load %arg3[%c0_3, %c0_4] : memref<1x256xf32, #tpu.memory_space<vmem>>, vector<1x256xf32>
    %4 = vector.broadcast %3 : vector<1x256xf32> to vector<8x256xf32>
    %5 = arith.addf %2, %4 : vector<8x256xf32>
    %cst_5 = arith.constant 0.000000e+00 : f32
    %6 = vector.broadcast %cst_5 : f32 to vector<8x256xf32>
    %7 = arith.maximumf %5, %6 : vector<8x256xf32>
    %8 = arith.truncf %7 : vector<8x256xf32> to vector<8x256xbf16>
    %c0_6 = arith.constant 0 : index
    %c0_7 = arith.constant 0 : index
    %9 = vector.load %arg4[%c0_6, %c0_7] : memref<256x128xbf16, #tpu.memory_space<vmem>>, vector<256x128xbf16>
    %cst_8 = arith.constant dense<0.000000e+00> : vector<8x128xf32>
    %10 = tpu.matmul %8, %9, %cst_8 {dimension_numbers = #tpu.dot_dimension_numbers<[1], [0], [0], [1], [0, 0, 1, 1], [], []>} : vector<8x256xbf16>, vector<256x128xbf16>, vector<8x128xf32> -> vector<8x128xf32>
    %c0_9 = arith.constant 0 : index
    %c0_10 = arith.constant 0 : index
    %11 = vector.load %arg5[%c0_9, %c0_10] : memref<1x128xf32, #tpu.memory_space<vmem>>, vector<1x128xf32>
    %12 = vector.broadcast %11 : vector<1x128xf32> to vector<8x128xf32>
    %13 = arith.addf %10, %12 : vector<8x128xf32>
    %c0_11 = arith.constant 0 : index
    %c0_12 = arith.constant 0 : index
    %14 = vector.load %arg6[%c0_11, %c0_12] : memref<8x128xf32, #tpu.memory_space<vmem>>, vector<8x128xf32>
    tpu.vector_store %arg6[%c0_11, %c0_12], %13 {strides = array<i32>} : memref<8x128xf32, #tpu.memory_space<vmem>>, vector<8x128xf32>,
    return
  }
  func.func @transform_0(%arg0: i32) -> (i32, i32) {
    %c0_i32 = arith.constant 0 : i32
    %c0_i32_0 = arith.constant 0 : i32
    return %arg0, %c0_i32 : i32, i32
  }
  func.func @transform_1(%arg0: i32) -> (i32, i32) {
    %c0_i32 = arith.constant 0 : i32
    %c0_i32_0 = arith.constant 0 : i32
    %c0_i32_1 = arith.constant 0 : i32
    return %c0_i32, %c0_i32_0 : i32, i32
  }
  func.func @transform_2(%arg0: i32) -> (i32, i32) {
    %c0_i32 = arith.constant 0 : i32
    %c0_i32_0 = arith.constant 0 : i32
    %c0_i32_1 = arith.constant 0 : i32
    return %c0_i32, %c0_i32_0 : i32, i32
  }
  func.func @transform_3(%arg0: i32) -> (i32, i32) {
    %c0_i32 = arith.constant 0 : i32
    %c0_i32_0 = arith.constant 0 : i32
    %c0_i32_1 = arith.constant 0 : i32
    return %c0_i32, %c0_i32_0 : i32, i32
  }
  func.func @transform_4(%arg0: i32) -> (i32, i32) {
    %c0_i32 = arith.constant 0 : i32
    %c0_i32_0 = arith.constant 0 : i32
    %c0_i32_1 = arith.constant 0 : i32
    return %c0_i32, %c0_i32_0 : i32, i32
  }
  func.func @transform_5(%arg0: i32) -> (i32, i32) {
    %c0_i32 = arith.constant 0 : i32
    %c0_i32_0 = arith.constant 0 : i32
    return %arg0, %c0_i32 : i32, i32
  }
}

</mosaic_0001>

<bundles_post_ra>
// kernel: tpu_custom_call.1
= control target key start
LH: loop header
LB: loop body
LE: loop exit
PB: predicated region body
PF: predicated region fallthrough
CT: control target
= control target key end

     0   :  { %10 = vsyncpa [#allocation3], 0  ;;  %s1455_s0 = inlined_call_operand.hbm [shape: bf16[8,768], index: 0, kind: input, shape index: {}]   ;;  %s1456_s1 = inlined_call_operand.hbm [shape: bf16[768,256], index: 1, kind: input, shape index: {}]   ;;  %s1457_s2 = inlined_call_operand.vmem [shape: f32[1,256], index: 2, kind: input, shape index: {}]   ;;  %s1458_s3 = inlined_call_operand.hbm [shape: bf16[256,128], index: 3, kind: input, shape index: {}]   ;;  %s1459_s4 = inlined_call_operand.vmem [shape: f32[1,128], index: 4, kind: input, shape index: {}]   ;;  %s1460_s5 = inlined_call_operand.hbm [shape: f32[8,128], index: 5, kind: output, shape index: {}]  }
   0x1   :  { %11 = vsyncpa [#allocation6], 0 }
   0x2   :  { %12 = vsyncpa [#allocation4], 0  ;;  %s1393_s18 = smov [#allocation5]  }
   0x3   :  { %s28_s19 = sshll.u32 %s1393_s18, 4  ;;  %s29_s19 = int_to_ptr.vmem [resolvable:$true] %s28_s19 }
   0x4   :  { %s1315_s20 = scalar_lea.vmem %s29_s19, 12288  ;;  %p1320_p1 = scmp.lt.s32.totalorder %s29_s19, %s29_s19 }
   0x5   :  { %p1316_p0 = scmp.ne.s32.totalorder %s29_s19, %s1315_s20  ;;  %p1321_p2 = scmp.lt.s32.totalorder %s1315_s20, %s1315_s20 }
   0x7   :  { %p1322_p3 = por %p1321_p2, %p1320_p1 }
   0x9   :  { %p1323_p4 = pnand %p1322_p3, %p1316_p0 }
   0xb   :  { %1326 = shalt.err (!%p1323_p4)
}
   0xc   :  { %s1394_s21 = smov 128   ;;  %s1395_s22 = smov 8  }
   0xd   :  { %34 = dma.hbm_to_vmem [thread:$0]  %s1456_s1, 12288, %s29_s19, [#allocation6], %s1394_s21, %s1394_s21, %s1395_s22  }
   0xe   :  { %s1396_s25 = smov [#allocation2]   ;;  %s1397_s27 = smov [#allocation7]  }
   0xf   :  { %s19_s26 = sshll.u32 %s1396_s25, 4  ;;  %s42_s28 = sshll.u32 %s1397_s27, 4  ;;  %s20_s26 = int_to_ptr.vmem [resolvable:$true] %s19_s26  ;;  %s43_s28 = int_to_ptr.vmem [resolvable:$true] %s42_s28 }
  0x10   :  { %s1335_s29 = scalar_lea.vmem %s20_s26, 384  ;;  %p1340_p6 = scmp.lt.s32.totalorder %s20_s26, %s20_s26 }
  0x11   :  { %p1336_p5 = scmp.ne.s32.totalorder %s20_s26, %s1335_s29  ;;  %p1341_p7 = scmp.lt.s32.totalorder %s1335_s29, %s1335_s29 }
  0x13   :  { %p1342_p8 = por %p1341_p7, %p1340_p6 }
  0x15   :  { %p1343_p9 = pnand %p1342_p8, %p1336_p5 }
  0x17   :  { %1346 = shalt.err (!%p1343_p9)
}
  0x18   :  { %22 = dma.hbm_to_vmem [thread:$0]  %s1455_s0, 384, %s20_s26, [#allocation3]  }
  0x19   :  { %s1355_s7 = scalar_lea.vmem %s43_s28, 2048  ;;  %p1360_p11 = scmp.lt.s32.totalorder %s43_s28, %s43_s28 }
  0x1a   :  { %p1356_p10 = scmp.ne.s32.totalorder %s43_s28, %s1355_s7  ;;  %p1361_p12 = scmp.lt.s32.totalorder %s1355_s7, %s1355_s7 }
  0x1c   :  { %p1362_p13 = por %p1361_p12, %p1360_p11 }
  0x1e   :  { %p1363_p0 = pnand %p1362_p13, %p1356_p10 }
  0x20   :  { %1366 = shalt.err (!%p1363_p0)
}
  0x21   :  { %s1398_s1 = smov 64   ;;  %s1399_s8 = smov 4  }
  0x22   :  { %48 = dma.hbm_to_vmem [thread:$0]  %s1458_s3, 2048, %s43_s28, [#allocation6], %s1398_s1, %s1398_s1, %s1399_s8  }
  0x23   :  { %1387 = dma.done.wait [#allocation3], 384  }
  0x24   :  { %1388 = vsyncadd [#allocation3], 4294966912 }
  0x25   :  { %1389 = dma.done.wait [#allocation6], 14336  }
  0x26   :  { %1390 = vsyncadd [#allocation6], 4294952960  ;;  %v1141_v0 = vld [vmem:[#allocation5 + $0x74] ss:$8 sps:$4 sm:$0xff]   ;;  %v1143_v1 = vld [vmem:[#allocation5 + $0x70] ss:$8 sps:$4 sm:$0xff]  }
  0x27   :  { %673 = vmatprep.subr.bf16.mxu0 %v1141_v0  ;;  %v1144_v2 = vld [vmem:[#allocation5 + $0x174] ss:$8 sps:$4 sm:$0xff]   ;;  %v1146_v3 = vld [vmem:[#allocation5 + $0x170] ss:$8 sps:$4 sm:$0xff]   ;;  %v1147_v4 = vld [vmem:[#allocation5 + $0x64] ss:$8 sps:$4 sm:$0xff]  }
  0x28   :  { %674 = vmatpush1.bf16.msra.mxu0 %v1143_v1  ;;  %v1149_v5 = vld [vmem:[#allocation5 + $0x60] ss:$8 sps:$4 sm:$0xff]   ;;  %714 = vmatprep.subr.bf16.mxu1 %v1144_v2  ;;  %v1150_v6 = vld [vmem:[#allocation5 + $0x164] ss:$8 sps:$4 sm:$0xff]   ;;  %v1153_v8 = vld [vmem:[#allocation5 + $0x54] ss:$8 sps:$4 sm:$0xff]  }
  0x29   :  { %715 = vmatpush1.bf16.msra.mxu1 %v1146_v3  ;;  %675 = vmatprep.subr.bf16.mxu0 %v1147_v4  ;;  %v1152_v7 = vld [vmem:[#allocation5 + $0x160] ss:$8 sps:$4 sm:$0xff]   ;;  %v1155_v9 = vld [vmem:[#allocation5 + $0x50] ss:$8 sps:$4 sm:$0xff]   ;;  %v1156_v10 = vld [vmem:[#allocation5 + $0x154] ss:$8 sps:$4 sm:$0xff]  }
  0x2a   :  { %716 = vmatprep.subr.bf16.mxu1 %v1150_v6  ;;  %v1159_v11 = vld [vmem:[#allocation5 + $0x44] ss:$8 sps:$4 sm:$0xff]   ;;  %v1158_v12 = vld [vmem:[#allocation5 + $0x150] ss:$8 sps:$4 sm:$0xff]   ;;  %v1161_v14 = vld [vmem:[#allocation5 + $0x40] ss:$8 sps:$4 sm:$0xff]  }
  0x2b   :  { %v1162_v13 = vld [vmem:[#allocation5 + $0x144] ss:$8 sps:$4 sm:$0xff]   ;;  %v1165_v15 = vld [vmem:[#allocation5 + $0x34] ss:$8 sps:$4 sm:$0xff]   ;;  %v1164_v16 = vld [vmem:[#allocation5 + $0x140] ss:$8 sps:$4 sm:$0xff]  }
  0x2c   :  { %676 = vmatpush1.bf16.msra.mxu0 %v1149_v5  ;;  %v1168_v17 = vld [vmem:[#allocation5 + $0x134] ss:$8 sps:$4 sm:$0xff]   ;;  %v1167_v18 = vld [vmem:[#allocation5 + $0x30] ss:$8 sps:$4 sm:$0xff]   ;;  %v1171_v19 = vld [vmem:[#allocation5 + $0x24] ss:$8 sps:$4 sm:$0xff]  }
  0x2d   :  { %677 = vmatprep.subr.bf16.mxu0 %v1153_v8  ;;  %717 = vmatpush1.bf16.msra.mxu1 %v1152_v7  ;;  %v1170_v20 = vld [vmem:[#allocation5 + $0x130] ss:$8 sps:$4 sm:$0xff]   ;;  %v1174_v21 = vld [vmem:[#allocation5 + $0x124] ss:$8 sps:$4 sm:$0xff]   ;;  %v1173_v22 = vld [vmem:[#allocation5 + $0x20] ss:$8 sps:$4 sm:$0xff]  }
  0x2e   :  { %718 = vmatprep.subr.bf16.mxu1 %v1156_v10  ;;  %v1177_v23 = vld [vmem:[#allocation5 + $0x14] ss:$8 sps:$4 sm:$0xff]   ;;  %v1176_v24 = vld [vmem:[#allocation5 + $0x120] ss:$8 sps:$4 sm:$0xff]   ;;  %v1179_v26 = vld [vmem:[#allocation5 + $0x10] ss:$8 sps:$4 sm:$0xff]  }
  0x2f   :  { %v1180_v25 = vld [vmem:[#allocation5 + $0x114] ss:$8 sps:$4 sm:$0xff]   ;;  %v1183_v27 = vld [vmem:[#allocation5 + $0x4] ss:$8 sps:$4 sm:$0xff]   ;;  %v1182_v28 = vld [vmem:[#allocation5 + $0x110] ss:$8 sps:$4 sm:$0xff]  }
  0x30   :  { %678 = vmatpush1.bf16.msra.mxu0 %v1155_v9  ;;  %v1186_v29 = vld [vmem:[#allocation5 + $0x104] ss:$8 sps:$4 sm:$0xff]   ;;  %v1185_v30 = vld [vmem:[#allocation5] ss:$8 sps:$4 sm:$0xff]   ;;  %v1189_v31 = vld [vmem:[#allocation5 + $0xf4] ss:$8 sps:$4 sm:$0xff]  }
  0x31   :  { %679 = vmatprep.subr.bf16.mxu0 %v1159_v11  ;;  %719 = vmatpush1.bf16.msra.mxu1 %v1158_v12  ;;  %v1188_v32 = vld [vmem:[#allocation5 + $0x100] ss:$8 sps:$4 sm:$0xff]   ;;  %v1192_v33 = vld [vmem:[#allocation5 + $0x1f4] ss:$8 sps:$4 sm:$0xff]   ;;  %v1191_v34 = vld [vmem:[#allocation5 + $0xf0] ss:$8 sps:$4 sm:$0xff]  }
  0x32   :  { %720 = vmatprep.subr.bf16.mxu1 %v1162_v13  ;;  %v1195_v35 = vld [vmem:[#allocation5 + $0xe4] ss:$8 sps:$4 sm:$0xff]   ;;  %v1194_v36 = vld [vmem:[#allocation5 + $0x1f0] ss:$8 sps:$4 sm:$0xff]   ;;  %v1197_v38 = vld [vmem:[#allocation5 + $0xe0] ss:$8 sps:$4 sm:$0xff]  }
  0x33   :  { %v1198_v37 = vld [vmem:[#allocation5 + $0x1e4] ss:$8 sps:$4 sm:$0xff]   ;;  %v1201_v39 = vld [vmem:[#allocation5 + $0xd4] ss:$8 sps:$4 sm:$0xff]   ;;  %v1200_v40 = vld [vmem:[#allocation5 + $0x1e0] ss:$8 sps:$4 sm:$0xff]  }
  0x34   :  { %680 = vmatpush1.bf16.msra.mxu0 %v1161_v14  ;;  %v1204_v41 = vld [vmem:[#allocation5 + $0x1d4] ss:$8 sps:$4 sm:$0xff]   ;;  %v1203_v42 = vld [vmem:[#allocation5 + $0xd0] ss:$8 sps:$4 sm:$0xff]   ;;  %v1207_v43 = vld [vmem:[#allocation5 + $0xc4] ss:$8 sps:$4 sm:$0xff]  }
  0x35   :  { %681 = vmatprep.subr.bf16.mxu0 %v1165_v15  ;;  %721 = vmatpush1.bf16.msra.mxu1 %v1164_v16  ;;  %v1206_v44 = vld [vmem:[#allocation5 + $0x1d0] ss:$8 sps:$4 sm:$0xff]   ;;  %v1210_v45 = vld [vmem:[#allocation5 + $0x1c4] ss:$8 sps:$4 sm:$0xff]   ;;  %v1209_v47 = vld [vmem:[#allocation5 + $0xc0] ss:$8 sps:$4 sm:$0xff]  }
  0x36   :  { %722 = vmatprep.subr.bf16.mxu1 %v1168_v17  ;;  %v61_v46 = vld [vmem:[#allocation2] sm:$0xff]  ;;  %v1213_v49 = vld [vmem:[#allocation5 + $0xb4] ss:$8 sps:$4 sm:$0xff]   ;;  %v1215_v54 = vld [vmem:[#allocation5 + $0xb0] ss:$8 sps:$4 sm:$0xff]   ;;  %s1400_s12 = smov [#allocation8]  }
  0x37   :  { %v993_v48 = vcombine.high %v61_v46, %v61_v46  ;;  %v62_v50 = vld [vmem:[#allocation2 + $0x8] sm:$0xff]  ;;  %v1212_v51 = vld [vmem:[#allocation5 + $0x1c0] ss:$8 sps:$4 sm:$0xff]   ;;  %v1219_v55 = vld [vmem:[#allocation5 + $0xa4] ss:$8 sps:$4 sm:$0xff]   ;;  %v992_v5 = vcombine.low %v61_v46, %v61_v46  ;;  %s982_s13 = sshll.u32 %s1400_s12, 4  ;;  %s983_s13 = int_to_ptr.vmem [resolvable:$true] %s982_s13 }
  0x38   :  { %682 = vmatpush1.bf16.msra.mxu0 %v1167_v18  ;;  %v995_v52 = vcombine.high %v62_v50, %v62_v50  ;;  %v1216_v53 = vld [vmem:[#allocation5 + $0x1b4] ss:$8 sps:$4 sm:$0xff]   ;;  %v1218_v56 = vld [vmem:[#allocation5 + $0x1b0] ss:$8 sps:$4 sm:$0xff]   ;;  %v1222_v57 = vld [vmem:[#allocation5 + $0x1a4] ss:$8 sps:$4 sm:$0xff]   ;;  %v994_v7 = vcombine.low %v62_v50, %v62_v50  ;;  %p1372_p2 = scmp.lt.s32.totalorder %s983_s13, %s983_s13 }
  0x39   :  { %683 = vmatprep.subr.bf16.mxu0 %v1171_v19  ;;  %723 = vmatpush1.bf16.msra.mxu1 %v1170_v20  ;;  %v1221_v58 = vld [vmem:[#allocation5 + $0xa0] ss:$8 sps:$4 sm:$0xff]   ;;  %v1225_v59 = vld [vmem:[#allocation5 + $0x94] ss:$8 sps:$4 sm:$0xff]   ;;  %v1227_v62 = vld [vmem:[#allocation5 + $0x90] ss:$8 sps:$4 sm:$0xff]  }
  0x3a   :  { %724 = vmatprep.subr.bf16.mxu1 %v1174_v21  ;;  %705 = vmatprep.mubr.bf16.mxu0 %v993_v48  ;;  %v1224_v60 = vld [vmem:[#allocation5 + $0x1a0] ss:$8 sps:$4 sm:$0xff]   ;;  %v1228_v61 = vld [vmem:[#allocation5 + $0x194] ss:$8 sps:$4 sm:$0xff]   ;;  %v1231_v63 = vld [vmem:[#allocation5 + $0x84] ss:$8 sps:$4 sm:$0xff]  }
  0x3b   :  { %746 = vmatprep.mubr.bf16.mxu1 %v995_v52  ;;  %v1230_v0 = vld [vmem:[#allocation5 + $0x190] ss:$8 sps:$4 sm:$0xff]   ;;  %v1234_v1 = vld [vmem:[#allocation5 + $0x184] ss:$8 sps:$4 sm:$0xff]   ;;  %v1233_v2 = vld [vmem:[#allocation5 + $0x80] ss:$8 sps:$4 sm:$0xff]  }
  0x3c   :  { %684 = vmatpush1.bf16.msra.mxu0 %v1173_v22  ;;  %v1241_v3 = vld [vmem:[#allocation5 + $0x274] ss:$8 sps:$4 sm:$0xff]   ;;  %v1238_v4 = vld [vmem:[#allocation5 + $0x180] ss:$8 sps:$4 sm:$0xff]   ;;  %v1239_v6 = vld [vmem:[#allocation5 + $0x270] ss:$8 sps:$4 sm:$0xff]  }
  0x3d   :  { %685 = vmatprep.subr.bf16.mxu0 %v1177_v23  ;;  %725 = vmatpush1.bf16.msra.mxu1 %v1176_v24  ;;  %v1246_v8 = vld [vmem:[#allocation5 + $0x264] ss:$8 sps:$4 sm:$0xff]   ;;  %v1440_v9 = vld [vmem:[#allocation2 + $0x10] sm:$0xff]  ;;  %v1244_v10 = vld [vmem:[#allocation5 + $0x260] ss:$8 sps:$4 sm:$0xff]   ;;  %s1367_s14 = scalar_lea.vmem %s983_s13, 128 }
  0x3e   :  { %726 = vmatprep.subr.bf16.mxu1 %v1180_v25  ;;  %v997_v11 = vcombine.high %v1440_v9, %v1440_v9  ;;  %v1249_v12 = vld [vmem:[#allocation5 + $0x254] ss:$8 sps:$4 sm:$0xff]   ;;  %v1247_v13 = vld [vmem:[#allocation5 + $0x250] ss:$8 sps:$4 sm:$0xff]   ;;  %v1252_v14 = vld [vmem:[#allocation5 + $0x244] ss:$8 sps:$4 sm:$0xff]   ;;  %p1368_p1 = scmp.ne.s32.totalorder %s983_s13, %s1367_s14  ;;  %p1373_p3 = scmp.lt.s32.totalorder %s1367_s14, %s1367_s14 }
  0x3f   :  { %v1250_v15 = vld [vmem:[#allocation5 + $0x240] ss:$8 sps:$4 sm:$0xff]   ;;  %v1255_v16 = vld [vmem:[#allocation5 + $0x234] ss:$8 sps:$4 sm:$0xff]   ;;  %v1253_v17 = vld [vmem:[#allocation5 + $0x230] ss:$8 sps:$4 sm:$0xff]  }
  0x40   :  { %686 = vmatpush1.bf16.msra.mxu0 %v1179_v26  ;;  %v1258_v18 = vld [vmem:[#allocation5 + $0x224] ss:$8 sps:$4 sm:$0xff]   ;;  %v1256_v19 = vld [vmem:[#allocation5 + $0x220] ss:$8 sps:$4 sm:$0xff]   ;;  %v1261_v20 = vld [vmem:[#allocation5 + $0x214] ss:$8 sps:$4 sm:$0xff]   ;;  %p1374_p4 = por %p1373_p3, %p1372_p2 }
  0x41   :  { %687 = vmatprep.subr.bf16.mxu0 %v1183_v27  ;;  %727 = vmatpush1.bf16.msra.mxu1 %v1182_v28  ;;  %v1259_v21 = vld [vmem:[#allocation5 + $0x210] ss:$8 sps:$4 sm:$0xff]   ;;  %v1264_v22 = vld [vmem:[#allocation5 + $0x204] ss:$8 sps:$4 sm:$0xff]   ;;  %v1262_v23 = vld [vmem:[#allocation5 + $0x200] ss:$8 sps:$4 sm:$0xff]  }
  0x42   :  { %728 = vmatprep.subr.bf16.mxu1 %v1186_v29  ;;  %v1267_v24 = vld [vmem:[#allocation5 + $0x2f4] ss:$8 sps:$4 sm:$0xff]   ;;  %v1265_v25 = vld [vmem:[#allocation5 + $0x2f0] ss:$8 sps:$4 sm:$0xff]   ;;  %v1270_v26 = vld [vmem:[#allocation5 + $0x2e4] ss:$8 sps:$4 sm:$0xff]   ;;  %p1375_p5 = pnand %p1374_p4, %p1368_p1 }
  0x43   :  { %v1268_v27 = vld [vmem:[#allocation5 + $0x2e0] ss:$8 sps:$4 sm:$0xff]   ;;  %v1273_v28 = vld [vmem:[#allocation5 + $0x2d4] ss:$8 sps:$4 sm:$0xff]   ;;  %v1271_v29 = vld [vmem:[#allocation5 + $0x2d0] ss:$8 sps:$4 sm:$0xff]  }
  0x44   :  { %688 = vmatpush1.bf16.msra.mxu0 %v1185_v30  ;;  %v1276_v30 = vld [vmem:[#allocation5 + $0x2c4] ss:$8 sps:$4 sm:$0xff]   ;;  %v1300_v50 = vld [vmem:[#allocation7 + $0x18] sm:$0xff]   ;;  %v1302_v52 = vld [vmem:[#allocation7 + $0x10] sm:$0xff]  }
  0x45   :  { %689 = vmatprep.subr.bf16.mxu0 %v1189_v31  ;;  %729 = vmatpush1.bf16.msra.mxu1 %v1188_v32  ;;  %v1274_v31 = vld [vmem:[#allocation5 + $0x2c0] ss:$8 sps:$4 sm:$0xff]   ;;  %v1279_v32 = vld [vmem:[#allocation5 + $0x2b4] ss:$8 sps:$4 sm:$0xff]  }
  0x46   :  { %730 = vmatprep.subr.bf16.mxu1 %v1192_v33  ;;  %v1277_v33 = vld [vmem:[#allocation5 + $0x2b0] ss:$8 sps:$4 sm:$0xff]   ;;  %v1296_v46 = vld [vmem:[#allocation7 + $0x28] sm:$0xff]   ;;  %v1298_v48 = vld [vmem:[#allocation7 + $0x20] sm:$0xff]  }
  0x48   :  { %690 = vmatpush2.bf16.msra.mxu0 %v1191_v34  ;;  %v1282_v34 = vld [vmem:[#allocation5 + $0x2a4] ss:$8 sps:$4 sm:$0xff]  }
  0x49   :  { %691 = vmatprep.subr.bf16.mxu0 %v1195_v35  ;;  %731 = vmatpush2.bf16.msra.mxu1 %v1194_v36  ;;  %v1280_v35 = vld [vmem:[#allocation5 + $0x2a0] ss:$8 sps:$4 sm:$0xff]   ;;  %v1285_v36 = vld [vmem:[#allocation5 + $0x294] ss:$8 sps:$4 sm:$0xff]  }
  0x4a   :  { %732 = vmatprep.subr.bf16.mxu1 %v1198_v37  ;;  %v1283_v37 = vld [vmem:[#allocation5 + $0x290] ss:$8 sps:$4 sm:$0xff]  }
  0x4c   :  { %692 = vmatpush2.bf16.msra.mxu0 %v1197_v38  ;;  %v1288_v38 = vld [vmem:[#allocation5 + $0x284] ss:$8 sps:$4 sm:$0xff]  }
  0x4d   :  { %693 = vmatprep.subr.bf16.mxu0 %v1201_v39  ;;  %733 = vmatpush2.bf16.msra.mxu1 %v1200_v40  ;;  %v1286_v39 = vld [vmem:[#allocation5 + $0x280] ss:$8 sps:$4 sm:$0xff]   ;;  %v996_v40 = vcombine.low %v1440_v9, %v1440_v9 }
  0x4e   :  { %734 = vmatprep.subr.bf16.mxu1 %v1204_v41  ;;  %v1291_v41 = vld [vmem:[#allocation7 + $0x78] sm:$0xff]  }
  0x50   :  { %694 = vmatpush2.bf16.msra.mxu0 %v1203_v42  ;;  %v1292_v42 = vld [vmem:[#allocation7 + $0x38] sm:$0xff]  }
  0x51   :  { %695 = vmatprep.subr.bf16.mxu0 %v1207_v43  ;;  %735 = vmatpush2.bf16.msra.mxu1 %v1206_v44  ;;  %v1293_v43 = vld [vmem:[#allocation7 + $0x70] sm:$0xff]  }
  0x52   :  { %736 = vmatprep.subr.bf16.mxu1 %v1210_v45  ;;  %v1294_v44 = vld [vmem:[#allocation7 + $0x30] sm:$0xff]   ;;  %v1295_v45 = vld [vmem:[#allocation7 + $0x68] sm:$0xff]  }
  0x54   :  { %696 = vmatpush2.bf16.msra.mxu0 %v1209_v47  ;;  %v1297_v47 = vld [vmem:[#allocation7 + $0x60] sm:$0xff]  }
  0x55   :  { %697 = vmatprep.subr.bf16.mxu0 %v1213_v49  ;;  %737 = vmatpush2.bf16.msra.mxu1 %v1212_v51  ;;  %v1299_v49 = vld [vmem:[#allocation7 + $0x58] sm:$0xff]   ;;  %v1301_v51 = vld [vmem:[#allocation7 + $0x50] sm:$0xff]  }
  0x56   :  { %738 = vmatprep.subr.bf16.mxu1 %v1216_v53  ;;  %v1303_v53 = vld [vmem:[#allocation7 + $0x48] sm:$0xff]  }
  0x58   :  { %698 = vmatpush2.bf16.msra.mxu0 %v1215_v54  ;;  %v1304_v54 = vld [vmem:[#allocation7 + $0x8] sm:$0xff]  }
  0x59   :  { %699 = vmatprep.subr.bf16.mxu0 %v1219_v55  ;;  %739 = vmatpush2.bf16.msra.mxu1 %v1218_v56  ;;  %v1305_v55 = vld [vmem:[#allocation7 + $0x40] sm:$0xff]  }
  0x5a   :  { %740 = vmatprep.subr.bf16.mxu1 %v1222_v57  ;;  %v1306_v56 = vld [vmem:[#allocation7] sm:$0xff]  }
  0x5c   :  { %700 = vmatpush2.bf16.msra.mxu0 %v1221_v58 }
  0x5d   :  { %701 = vmatprep.subr.bf16.mxu0 %v1225_v59  ;;  %741 = vmatpush2.bf16.msra.mxu1 %v1224_v60 }
  0x5e   :  { %742 = vmatprep.subr.bf16.mxu1 %v1228_v61 }
  0x60   :  { %702 = vmatpush2.bf16.msra.mxu0 %v1227_v62 }
  0x61   :  { %703 = vmatprep.subr.bf16.mxu0 %v1231_v63  ;;  %743 = vmatpush2.bf16.msra.mxu1 %v1230_v0 }
  0x62   :  { %744 = vmatprep.subr.bf16.mxu1 %v1234_v1  ;;  %v162_v1 = vlaneseq }
  0x64   :  { %704 = vmatpush2.bf16.msra.mxu0 %v1233_v2  ;;  %v163_v2 = vshrl.u32 %v162_v1, 7 }
  0x65   :  { %755 = vmatprep.subr.bf16.mxu0 %v1241_v3  ;;  %745 = vmatpush2.bf16.msra.mxu1 %v1238_v4  ;;  %v160_v4 = vld [vmem:[%s1457_s2] sm:$0x3] }
  0x66   :  { %1111 = vmatprep.subr.bf16.mxu1 %v1291_v41  ;;  %v164_v3 = vsub.s32 0, %v163_v2 }
  0x67   :  { %706 = vmatmul.mubr.bf16.vlgmr.msra.gmra.mxu0 %v992_v5  ;;  %v168_v5 = vsub.s32 1, %v163_v2 }
  0x68   :  { %756 = vmatpush1.bf16.msra.mxu0 %v1239_v6  ;;  %787 = vmatprep.mubr.bf16.mxu0 %v997_v11  ;;  %v165_v6 = vrot.slane %v160_v4, %v164_v3 }
  0x69   :  { %747 = vmatmul.mubr.bf16.vlgmr.msra.gmra.mxu1 %v994_v7  ;;  %757 = vmatprep.subr.bf16.mxu0 %v1246_v8  ;;  %v169_v7 = vrot.slane %v160_v4, %v168_v5 }
  0x6a   :  { %1112 = vmatpush3.bf16.msra.mxu1 %v1292_v42 }
  0x6b   :  { %1113 = vmatprep.subr.bf16.mxu1 %v1293_v43 }
  0x6c   :  { %758 = vmatpush1.bf16.msra.mxu0 %v1244_v10 }
  0x6d   :  { %759 = vmatprep.subr.bf16.mxu0 %v1249_v12 }
  0x6e   :  { %1114 = vmatpush3.bf16.msra.mxu1 %v1294_v44 }
  0x6f   :  { %1115 = vmatprep.subr.bf16.mxu1 %v1295_v45 }
  0x70   :  { %760 = vmatpush1.bf16.msra.mxu0 %v1247_v13 }
  0x71   :  { %761 = vmatprep.subr.bf16.mxu0 %v1252_v14 }
  0x72   :  { %1116 = vmatpush3.bf16.msra.mxu1 %v1296_v46 }
  0x73   :  { %1117 = vmatprep.subr.bf16.mxu1 %v1297_v47 }
  0x74   :  { %762 = vmatpush1.bf16.msra.mxu0 %v1250_v15 }
  0x75   :  { %763 = vmatprep.subr.bf16.mxu0 %v1255_v16 }
  0x76   :  { %1118 = vmatpush3.bf16.msra.mxu1 %v1298_v48 }
  0x77   :  { %1119 = vmatprep.subr.bf16.mxu1 %v1299_v49 }
  0x78   :  { %764 = vmatpush1.bf16.msra.mxu0 %v1253_v17 }
  0x79   :  { %765 = vmatprep.subr.bf16.mxu0 %v1258_v18 }
  0x7a   :  { %1120 = vmatpush3.bf16.msra.mxu1 %v1300_v50 }
  0x7b   :  { %1121 = vmatprep.subr.bf16.mxu1 %v1301_v51 }
  0x7c   :  { %766 = vmatpush1.bf16.msra.mxu0 %v1256_v19 }
  0x7d   :  { %767 = vmatprep.subr.bf16.mxu0 %v1261_v20 }
  0x7e   :  { %1122 = vmatpush3.bf16.msra.mxu1 %v1302_v52 }
  0x7f   :  { %1123 = vmatprep.subr.bf16.mxu1 %v1303_v53 }
  0x80   :  { %768 = vmatpush1.bf16.msra.mxu0 %v1259_v21 }
  0x81   :  { %769 = vmatprep.subr.bf16.mxu0 %v1264_v22 }
  0x82   :  { %1124 = vmatpush3.bf16.msra.mxu1 %v1304_v54 }
  0x83   :  { %1125 = vmatprep.subr.bf16.mxu1 %v1305_v55 }
  0x84   :  { %770 = vmatpush1.bf16.msra.mxu0 %v1262_v23  ;;  %v1094_v23 = vld [vmem:[%s1459_s4] ss:$0 sm:$0xff] }
  0x85   :  { %771 = vmatprep.subr.bf16.mxu0 %v1267_v24 }
  0x86   :  { %1126 = vmatpush3.bf16.msra.mxu1 %v1306_v56 }
  0x88   :  { %772 = vmatpush2.bf16.msra.mxu0 %v1265_v25 }
  0x89   :  { %773 = vmatprep.subr.bf16.mxu0 %v1270_v26 }
  0x8c   :  { %774 = vmatpush2.bf16.msra.mxu0 %v1268_v27 }
  0x8d   :  { %775 = vmatprep.subr.bf16.mxu0 %v1273_v28 }
  0x90   :  { %776 = vmatpush2.bf16.msra.mxu0 %v1271_v29 }
  0x91   :  { %777 = vmatprep.subr.bf16.mxu0 %v1276_v30 }
  0x94   :  { %778 = vmatpush2.bf16.msra.mxu0 %v1274_v31 }
  0x95   :  { %779 = vmatprep.subr.bf16.mxu0 %v1279_v32 }
  0x98   :  { %780 = vmatpush2.bf16.msra.mxu0 %v1277_v33 }
  0x99   :  { %781 = vmatprep.subr.bf16.mxu0 %v1282_v34 }
  0x9c   :  { %782 = vmatpush2.bf16.msra.mxu0 %v1280_v35 }
  0x9d   :  { %783 = vmatprep.subr.bf16.mxu0 %v1285_v36 }
  0xa0   :  { %784 = vmatpush2.bf16.msra.mxu0 %v1283_v37 }
  0xa1   :  { %785 = vmatprep.subr.bf16.mxu0 %v1288_v38 }
  0xa4   :  { %786 = vmatpush2.bf16.msra.mxu0 %v1286_v39 }
  0xa7   :  { %788 = vmatmul.mubr.bf16.vlgmr.msra.gmra.mxu0 %v996_v40 }
 0x127   :  { %v707_v57 = vpop.f32.mrf.mxu0 }
 0x128   :  { %v708_v8 = vadd.f32 %v707_v57, %v165_v6 }
 0x129   :  { %v709_v58 = vpop.f32.mrf.mxu0  ;;  %v748_v59 = vpop.f32.mrf.mxu1 }
 0x12a   :  { %v710_v9 = vadd.f32 %v709_v58, %v169_v7  ;;  %v749_v10 = vadd.f32 %v748_v59, %v708_v8 }
 0x12b   :  { %v711_v60 = vpop.f32.mrf.mxu0  ;;  %v750_v61 = vpop.f32.mrf.mxu1 }
 0x12c   :  { %v751_v12 = vadd.f32 %v750_v61, %v710_v9 }
 0x12d   :  { %v712_v62 = vpop.f32.mrf.mxu0  ;;  %v752_v63 = vpop.f32.mrf.mxu1 }
 0x12f   :  { %v753_v0 = vpop.f32.mrf.mxu1 }
 0x167   :  { %v789_v11 = vpop.f32.mrf.mxu0 }
 0x168   :  { %v790_v13 = vadd.f32 %v789_v11, %v749_v10 }
 0x169   :  { %v791_v14 = vpop.f32.mrf.mxu0 }
 0x16a   :  { %v792_v15 = vadd.f32 %v791_v14, %v751_v12  ;;  %v796_v16 = vmax.f32 %v790_v13, 0.0 }
 0x16b   :  { %v793_v17 = vpop.f32.mrf.mxu0 }
 0x16c   :  { %v797_v18 = vmax.f32 %v792_v15, 0.0  ;;  %v798_v21 = vpack.c.bf16 %v796_v16, %v796_v16 }
 0x16d   :  { %v794_v19 = vpop.f32.mrf.mxu0 }
 0x16e   :  { %v799_v20 = vpack.c.bf16 %v797_v18, %v797_v18 }
 0x170   :  { %967 = vmatprep.mubr.bf16.mxu1 %v799_v20 }
 0x171   :  { %968 = vmatmul.mubr.bf16.vlgmr.msra.gmra.mxu1 %v798_v21 }
 0x231   :  { %v1127_v22 = vpop.f32.mrf.mxu1 }
 0x233   :  { %v1128_v24 = vpop.f32.mrf.mxu1 }
 0x234   :  { %v1129_v25 = vadd.f32 %v1128_v24, %v1127_v22 }
 0x235   :  { %v1130_v26 = vpop.f32.mrf.mxu1 }
 0x236   :  { %v970_v27 = vadd.f32 %v1129_v25, %v1094_v23 }
 0x237   :  { %v1131_v28 = vpop.f32.mrf.mxu1 }
 0x238   :  { %975 = vst [vmem:[#allocation8] sm:$0xff] %v970_v27 }
 0x239   :  { %1378 = shalt.err (!%p1375_p5)
}
 0x23a   :  { %985 = dma.vmem_to_hbm [thread:$0]  %s983_s13, 128, %s1460_s5, [#allocation4]  }
 0x23b   :  { %1391 = dma.done.wait [#allocation4], 128  }
 0x23c   :  { %1392 = vsyncadd [#allocation4], 4294967168 }
 0x23d   :  { %989 = vsyncpa [#allocation3], 1 }
 0x23e   :  { %990 = vsyncpa [#allocation6], 1 }
 0x23f   :  { %991 = vsyncpa [#allocation4], 1 }

</bundles_post_ra>
